<compile_context>
chip_gen: v6e
topology: v6e:2x2x1
jax: 0.10.0
libtpu: 0.0.40
codegen_flags: <defaults>
</compile_context>

<pallas_src>
import functools

import jax
import jax.numpy as jnp
from jax import lax
from jax.experimental import pallas as pl
from jax.experimental.pallas import tpu as pltpu


def subspace_kernel(x_ref, a_ref, b_ref, wp_ref, pb_ref, o_ref, *, W):
    """One grid step: a (BT, C, H*W) slab of the batch.

    x_ref  : (BT, C, HW) VMEM  input activations (f32 or bf16)
    a_ref  : (C, 1)      VMEM  depthwise conv * BN scale (folded), f32
    b_ref  : (C, 1)      VMEM  depthwise conv * BN bias  (folded), f32
    wp_ref : (C, 1)      VMEM  pointwise conv weight with BN scale folded in
    pb_ref : (1,)        SMEM  pointwise conv bias with BN folded in
    o_ref  : (BT, C, HW) VMEM  output (same dtype as x)
    """
    BT, C, HW = x_ref.shape

    # Boundary masks for the separable 3x3 max-pool on the flat (H*W) layout.
    # Computed once per grid step; broadcast over the whole (BT, C, HW) slab.
    lane = lax.broadcasted_iota(jnp.int32, (1, 1, HW), 2)
    col = lane % W
    m_left = col > 0              # x[i-1] stays inside the same image row
    m_right = col < (W - 1)       # x[i+1] stays inside the same image row
    m_up = lane >= W              # x[i-W] stays inside the image
    m_down = lane < (HW - W)      # x[i+W] stays inside the image

    x = x_ref[...].astype(jnp.float32)        # (BT, C, HW); compute in f32
    a = a_ref[...]                            # (C, 1) -> broadcasts to (1, C, 1)
    b = b_ref[...]
    wp = wp_ref[...]
    pb = pb_ref[0]

    # depthwise 1x1 conv + BN (folded affine) + ReLU, whole slab at once.
    y = jnp.maximum(a * x + b, 0.0)           # (BT, C, HW), >= 0

    # 3x3 max-pool, stride 1, pad 1 — separable, masked lane rolls (XLU).
    # pltpu.roll: result[i] = x[(i - shift) % N]; shift must be >= 0, so
    # "-1"/"-W" become HW-1 / HW-W and the circular wrap is masked out.
    # Values are post-ReLU (>= 0), so 0.0 is a safe masked fill.
    left = jnp.where(m_left, pltpu.roll(y, shift=1, axis=2), 0.0)
    right = jnp.where(m_right, pltpu.roll(y, shift=HW - 1, axis=2), 0.0)
    rowmax = jnp.maximum(jnp.maximum(left, y), right)
    up = jnp.where(m_up, pltpu.roll(rowmax, shift=W, axis=2), 0.0)
    down = jnp.where(m_down, pltpu.roll(rowmax, shift=HW - W, axis=2), 0.0)
    pooled = jnp.maximum(jnp.maximum(up, rowmax), down)

    # pointwise 1x1 conv (C -> 1) as a weighted sublane-axis sum, + bias + ReLU.
    # NOTE: C is tiny, so this stays on the VPU/XLU; an (HW, C) x (C, 1) MXU
    # matmul only pays off for C >= 128.
    s = jnp.maximum(jnp.sum(pooled * wp, axis=1) + pb, 0.0)    # (BT, HW)

    # softmax over the flattened spatial dim (PyTorch softmax(dim=2) on
    # (m, 1, p*q)), fused with the residual:  out = x * (1 + attn).
    e = jnp.exp(s - jnp.max(s, axis=-1, keepdims=True))
    z = jnp.sum(e, axis=-1, keepdims=True)
    scale = 1.0 + e * pl.reciprocal(z, approx=True)            # EUP slot
    o_ref[...] = (x * scale[:, None, :]).astype(o_ref.dtype)   # one big store


def _tpu_vmem_capacity_bytes():
    try:
        return int(pltpu.get_tpu_info().vmem_capacity_bytes)
    except Exception:
        return 64 << 20          # conservative default (v7x per-TC VMEM)


def _num_tensorcores():
    try:
        kind = (getattr(jax.devices()[0], "device_kind", "") or "").lower()
        if "v7" in kind:
            return 2             # v7x: 2 TensorCores per chip
    except Exception:
        pass
    return 1                     # v5e / v6e: 1 TensorCore


def _pick_batch_tile(B, C, HW, itemsize, vmem_cap, num_tc):
    """Largest divisor of B giving ~2-4 MiB blocks within the VMEM budget."""
    per_batch = max(1, C * HW * itemsize)
    # ~2-4 MiB blocks reach >=85% of HBM roofline; cap by a per-generation
    # budget so 2x(in+out) double buffers + f32 temporaries still fit
    # (v7x: 64 MiB physical VMEM; v5e/v6e: 128 MiB).
    target = int(min(4 << 20, max(1 << 20, vmem_cap // 32)))
    bt = max(1, min(B, target // per_batch))
    if num_tc > 1 and B >= num_tc:
        # keep >= num_tc steps on the 'parallel' axis so every TensorCore
        # gets work (v7x only; no cap on single-TC v5e/v6e).
        bt = min(bt, B // num_tc)
    while B % bt:
        bt -= 1
    return bt


def subspace_forward(x, dw_a, dw_b, wp_eff, pb_eff, *, batch_tile=None):
    B, C, H, W = x.shape
    HW = H * W
    # Lane-dense layout: last dim = H*W (a multiple of 128 here).
    # TODO(synk): for realistic shapes where H*W is not a multiple of 128, pad
    # the spatial dim (and mask the softmax) to keep stores unmasked.
    x2 = x.reshape(B, C, HW)

    vmem_cap = _tpu_vmem_capacity_bytes()
    num_tc = _num_tensorcores()
    bt = batch_tile or _pick_batch_tile(B, C, HW, x2.dtype.itemsize, vmem_cap,
                                        num_tc)
    assert B % bt == 0

    a2 = dw_a.reshape(C, 1).astype(jnp.float32)
    b2 = dw_b.reshape(C, 1).astype(jnp.float32)
    wp2 = wp_eff.reshape(C, 1).astype(jnp.float32)
    pb1 = pb_eff.reshape(1).astype(jnp.float32)

    block_bytes = bt * C * HW * x2.dtype.itemsize
    # in+out double buffers, f32 temporaries, headroom; stay under roughly
    # half the physical VMEM of the current generation.
    vmem_limit = int(min(max(16 << 20, vmem_cap // 2),
                         max(16 << 20, 12 * block_bytes + (2 << 20))))

    # TODO(synk): if profiling on v7x shows exposed input DMA at large blocks,
    # add pipeline_mode=pl.Buffered(3) to the input BlockSpec.
    out2 = pl.pallas_call(
        functools.partial(subspace_kernel, W=W),
        out_shape=jax.ShapeDtypeStruct((B, C, HW), x.dtype),
        grid_spec=pltpu.PrefetchScalarGridSpec(
            num_scalar_prefetch=0,
            grid=(B // bt,),
            in_specs=[
                pl.BlockSpec((bt, C, HW), lambda i: (i, 0, 0)),
                pl.BlockSpec((C, 1), lambda i: (0, 0)),
                pl.BlockSpec((C, 1), lambda i: (0, 0)),
                pl.BlockSpec((C, 1), lambda i: (0, 0)),
                pl.BlockSpec(memory_space=pltpu.MemorySpace.SMEM),
            ],
            out_specs=pl.BlockSpec((bt, C, HW), lambda i: (i, 0, 0)),
        ),
        compiler_params=pltpu.CompilerParams(
            dimension_semantics=("parallel",),
            vmem_limit_bytes=vmem_limit,
        ),
    )(x2, a2, b2, wp2, pb1)
    return out2.reshape(B, C, H, W)


def subspace_reference(x, dw_a, dw_b, wp_eff, pb_eff):
    """Pure-JAX f32 reference."""
    B, C, H, W = x.shape
    a = dw_a.reshape(1, C, 1, 1)
    b = dw_b.reshape(1, C, 1, 1)
    y = jnp.maximum(a * x + b, 0.0)
    yp = jnp.pad(y, ((0, 0), (0, 0), (1, 1), (1, 1)), constant_values=-jnp.inf)
    pooled = yp[:, :, 1:1 + H, 1:1 + W]
    for i in range(3):
        for j in range(3):
            pooled = jnp.maximum(pooled, yp[:, :, i:i + H, j:j + W])
    s = jnp.maximum(
        jnp.sum(pooled * wp_eff.reshape(1, C, 1, 1), axis=1) + pb_eff[0], 0.0)
    attn = jax.nn.softmax(s.reshape(B, -1), axis=-1).reshape(B, 1, H, W)
    return x * attn + x


if __name__ == "__main__":
    key = jax.random.PRNGKey(0)
    B, C, H, W = 2, 4, 16, 16
    ks = jax.random.split(key, 12)
    x = jax.random.normal(ks[0], (B, C, H, W), jnp.float32)

    eps = 1e-5
    # conv_dws: depthwise 1x1 -> per-channel weight/bias
    w_dw = 0.5 * jax.random.normal(ks[1], (C,), jnp.float32)
    b_dw = 0.1 * jax.random.normal(ks[2], (C,), jnp.float32)
    # bn_dws params / running stats (inference mode)
    # TODO(synk): PyTorch training-mode batch statistics are not modeled; eval-mode BN is used.
    g_dw = 1.0 + 0.1 * jax.random.normal(ks[3], (C,), jnp.float32)
    beta_dw = 0.1 * jax.random.normal(ks[4], (C,), jnp.float32)
    mu_dw = 0.1 * jax.random.normal(ks[5], (C,), jnp.float32)
    var_dw = jnp.abs(jax.random.normal(ks[6], (C,), jnp.float32)) + 0.5
    # conv_point: 1x1, C -> 1
    w_pt = 0.5 * jax.random.normal(ks[7], (C,), jnp.float32)
    b_pt = 0.1 * jax.random.normal(ks[8], (), jnp.float32)
    # bn_point params / running stats
    g_pt = 1.0 + 0.1 * jax.random.normal(ks[9], (), jnp.float32)
    beta_pt = 0.1 * jax.random.normal(ks[10], (), jnp.float32)
    mu_pt = 0.1 * jax.random.normal(ks[11], (), jnp.float32)
    var_pt = jnp.float32(0.8)

    # fold conv(1x1) + BN(inference) into per-channel affine parameters
    inv_dw = g_dw / jnp.sqrt(var_dw + eps)
    dw_a = inv_dw * w_dw                                      # (C,)
    dw_b = inv_dw * (b_dw - mu_dw) + beta_dw                  # (C,)
    inv_pt = g_pt / jnp.sqrt(var_pt + eps)
    wp_eff = inv_pt * w_pt                                    # (C,)
    pb_eff = (inv_pt * (b_pt - mu_pt) + beta_pt).reshape(1)   # (1,)

    # f32 run (matches the PyTorch module's dtype).  Tolerance allows the
    # EUP approx reciprocal in the softmax denominator.
    out = jax.block_until_ready(subspace_forward(x, dw_a, dw_b, wp_eff, pb_eff))
    ref = subspace_reference(x, dw_a, dw_b, wp_eff, pb_eff)
    assert out.shape == (B, C, H, W)
    assert jnp.allclose(out, ref, rtol=1e-3, atol=1e-4), \
        float(jnp.max(jnp.abs(out - ref)))

    # bf16 I/O run (halves HBM traffic for this memory-bound kernel; internal
    # arithmetic and the softmax remain f32), validated loosely
    x_bf = x.astype(jnp.bfloat16)
    out_bf = jax.block_until_ready(subspace_forward(x_bf, dw_a, dw_b, wp_eff, pb_eff))
    ref_bf = subspace_reference(x_bf.astype(jnp.float32), dw_a, dw_b, wp_eff, pb_eff)
    assert out_bf.dtype == jnp.bfloat16
    assert jnp.allclose(out_bf.astype(jnp.float32), ref_bf, rtol=2e-2, atol=2e-2), \
        float(jnp.max(jnp.abs(out_bf.astype(jnp.float32) - ref_bf)))

    print("KERNEL_OK")
</pallas_src>

<mosaic_0001>
module attributes {stable_mosaic.version = 11 : i64} {
  func.func @subspace_kernel(%arg0: i32, %arg1: memref<2x4x256xf32, #tpu.memory_space<vmem>>, %arg2: memref<4x1xf32, #tpu.memory_space<vmem>>, %arg3: memref<4x1xf32, #tpu.memory_space<vmem>>, %arg4: memref<4x1xf32, #tpu.memory_space<vmem>>, %arg5: memref<1xf32, #tpu.memory_space<smem>>, %arg6: memref<2x4x256xf32, #tpu.memory_space<vmem>>) attributes {dimension_semantics = [#tpu.dimension_semantics<parallel>], iteration_bounds = array<i64: 1>, scalar_prefetch = 0 : i64, scratch_operands = 0 : i64, tpu.core_type = #tpu.core_type<tc>, window_params = [{transform_indices = @transform_0, window_bounds = array<i64: 2, 4, 256>}, {pipeline_mode = #tpu.pipeline_mode<synchronous>, transform_indices = @transform_1, window_bounds = array<i64: 4, 1>}, {pipeline_mode = #tpu.pipeline_mode<synchronous>, transform_indices = @transform_2, window_bounds = array<i64: 4, 1>}, {pipeline_mode = #tpu.pipeline_mode<synchronous>, transform_indices = @transform_3, window_bounds = array<i64: 4, 1>}, {transform_indices = @transform_4, window_bounds = array<i64: 1>}, {transform_indices = @transform_5, window_bounds = array<i64: 2, 4, 256>}]} {
    %0 = tpu.iota {dimensions = array<i32: 2>} : vector<1x1x256xi32>
    %c16_i32 = arith.constant 16 : i32
    %c0_i32 = arith.constant 0 : i32
    %1 = arith.cmpi eq, %c16_i32, %c0_i32 : i32
    %c1_i32 = arith.constant 1 : i32
    %2 = arith.select %1, %c1_i32, %c16_i32 : i32
    %3 = vector.broadcast %2 : i32 to vector<1x1x256xi32>
    %4 = arith.remsi %0, %3 : vector<1x1x256xi32>
    %c0_i32_0 = arith.constant 0 : i32
    %5 = vector.broadcast %c0_i32_0 : i32 to vector<1x1x256xi32>
    %6 = arith.cmpi ne, %4, %5 : vector<1x1x256xi32>
    %c0_i32_1 = arith.constant 0 : i32
    %7 = vector.broadcast %c0_i32_1 : i32 to vector<1x1x256xi32>
    %8 = arith.cmpi slt, %4, %7 : vector<1x1x256xi32>
    %c0_i32_2 = arith.constant 0 : i32
    %9 = arith.cmpi slt, %2, %c0_i32_2 : i32
    %10 = vector.broadcast %9 : i1 to vector<1x1x256xi1>
    %11 = vector.broadcast %10 : vector<1x1x256xi1> to vector<1x1x256xi1>
    %12 = arith.xori %8, %11 : vector<1x1x256xi1>
    %13 = arith.andi %12, %6 : vector<1x1x256xi1>
    %14 = vector.broadcast %2 : i32 to vector<1x1x256xi32>
    %15 = arith.addi %4, %14 : vector<1x1x256xi32>
    %16 = arith.select %13, %15, %4 : vector<1x1x256xi1>, vector<1x1x256xi32>
    %c0_i32_3 = arith.constant 0 : i32
    %17 = vector.broadcast %c0_i32_3 : i32 to vector<1x1x256xi32>
    %18 = arith.cmpi sgt, %16, %17 : vector<1x1x256xi32>
    %c15_i32 = arith.constant 15 : i32
    %19 = vector.broadcast %c15_i32 : i32 to vector<1x1x256xi32>
    %20 = arith.cmpi slt, %16, %19 : vector<1x1x256xi32>
    %c16_i32_4 = arith.constant 16 : i32
    %21 = vector.broadcast %c16_i32_4 : i32 to vector<1x1x256xi32>
    %22 = arith.cmpi sge, %0, %21 : vector<1x1x256xi32>
    %c240_i32 = arith.constant 240 : i32
    %23 = vector.broadcast %c240_i32 : i32 to vector<1x1x256xi32>
    %24 = arith.cmpi slt, %0, %23 : vector<1x1x256xi32>
    %c0 = arith.constant 0 : index
    %c0_5 = arith.constant 0 : index
    %c0_6 = arith.constant 0 : index
    %25 = vector.load %arg1[%c0, %c0_5, %c0_6] : memref<2x4x256xf32, #tpu.memory_space<vmem>>, vector<2x4x256xf32>
    %c0_7 = arith.constant 0 : index
    %c0_8 = arith.constant 0 : index
    %26 = vector.load %arg2[%c0_7, %c0_8] : memref<4x1xf32, #tpu.memory_space<vmem>>, vector<4x1xf32>
    %c0_9 = arith.constant 0 : index
    %c0_10 = arith.constant 0 : index
    %27 = vector.load %arg3[%c0_9, %c0_10] : memref<4x1xf32, #tpu.memory_space<vmem>>, vector<4x1xf32>
    %c0_11 = arith.constant 0 : index
    %c0_12 = arith.constant 0 : index
    %28 = vector.load %arg4[%c0_11, %c0_12] : memref<4x1xf32, #tpu.memory_space<vmem>>, vector<4x1xf32>
    %c0_13 = arith.constant 0 : index
    %29 = memref.load %arg5[%c0_13] : memref<1xf32, #tpu.memory_space<smem>>
    %30 = vector.shape_cast %26 : vector<4x1xf32> to vector<1x4x1xf32>
    %31 = vector.broadcast %30 : vector<1x4x1xf32> to vector<2x4x256xf32>
    %32 = arith.mulf %31, %25 : vector<2x4x256xf32>
    %33 = vector.shape_cast %27 : vector<4x1xf32> to vector<1x4x1xf32>
    %34 = vector.broadcast %33 : vector<1x4x1xf32> to vector<2x4x256xf32>
    %35 = arith.addf %32, %34 : vector<2x4x256xf32>
    %cst = arith.constant 0.000000e+00 : f32
    %36 = vector.broadcast %cst : f32 to vector<2x4x256xf32>
    %37 = arith.maximumf %35, %36 : vector<2x4x256xf32>
    %c1_i32_14 = arith.constant 1 : i32
    %38 = tpu.dynamic_rotate %37 by %c1_i32_14 dim 2 : vector<2x4x256xf32>, i32 -> vector<2x4x256xf32>
    %cst_15 = arith.constant 0.000000e+00 : f32
    %39 = vector.shape_cast %18 : vector<1x1x256xi1> to vector<1x1x256xi1>
    %40 = vector.broadcast %39 : vector<1x1x256xi1> to vector<2x4x256xi1>
    %41 = vector.broadcast %cst_15 : f32 to vector<2x4x256xf32>
    %42 = arith.select %40, %38, %41 : vector<2x4x256xi1>, vector<2x4x256xf32>
    %c255_i32 = arith.constant 255 : i32
    %43 = tpu.dynamic_rotate %37 by %c255_i32 dim 2 : vector<2x4x256xf32>, i32 -> vector<2x4x256xf32>
    %cst_16 = arith.constant 0.000000e+00 : f32
    %44 = vector.shape_cast %20 : vector<1x1x256xi1> to vector<1x1x256xi1>
    %45 = vector.broadcast %44 : vector<1x1x256xi1> to vector<2x4x256xi1>
    %46 = vector.broadcast %cst_16 : f32 to vector<2x4x256xf32>
    %47 = arith.select %45, %43, %46 : vector<2x4x256xi1>, vector<2x4x256xf32>
    %48 = arith.maximumf %42, %37 : vector<2x4x256xf32>
    %49 = arith.maximumf %48, %47 : vector<2x4x256xf32>
    %c16_i32_17 = arith.constant 16 : i32
    %50 = tpu.dynamic_rotate %49 by %c16_i32_17 dim 2 : vector<2x4x256xf32>, i32 -> vector<2x4x256xf32>
    %cst_18 = arith.constant 0.000000e+00 : f32
    %51 = vector.shape_cast %22 : vector<1x1x256xi1> to vector<1x1x256xi1>
    %52 = vector.broadcast %51 : vector<1x1x256xi1> to vector<2x4x256xi1>
    %53 = vector.broadcast %cst_18 : f32 to vector<2x4x256xf32>
    %54 = arith.select %52, %50, %53 : vector<2x4x256xi1>, vector<2x4x256xf32>
    %c240_i32_19 = arith.constant 240 : i32
    %55 = tpu.dynamic_rotate %49 by %c240_i32_19 dim 2 : vector<2x4x256xf32>, i32 -> vector<2x4x256xf32>
    %cst_20 = arith.constant 0.000000e+00 : f32
    %56 = vector.shape_cast %24 : vector<1x1x256xi1> to vector<1x1x256xi1>
    %57 = vector.broadcast %56 : vector<1x1x256xi1> to vector<2x4x256xi1>
    %58 = vector.broadcast %cst_20 : f32 to vector<2x4x256xf32>
    %59 = arith.select %57, %55, %58 : vector<2x4x256xi1>, vector<2x4x256xf32>
    %60 = arith.maximumf %54, %49 : vector<2x4x256xf32>
    %61 = arith.maximumf %60, %59 : vector<2x4x256xf32>
    %62 = vector.shape_cast %28 : vector<4x1xf32> to vector<1x4x1xf32>
    %63 = vector.broadcast %62 : vector<1x4x1xf32> to vector<2x4x256xf32>
    %64 = arith.mulf %61, %63 : vector<2x4x256xf32>
    %cst_21 = arith.constant dense<0.000000e+00> : vector<2x256xf32>
    %65 = vector.multi_reduction <add>, %64, %cst_21 [1] : vector<2x4x256xf32> to vector<2x256xf32>
    %66 = vector.broadcast %29 : f32 to vector<2x256xf32>
    %67 = arith.addf %65, %66 : vector<2x256xf32>
    %cst_22 = arith.constant 0.000000e+00 : f32
    %68 = vector.broadcast %cst_22 : f32 to vector<2x256xf32>
    %69 = arith.maximumf %67, %68 : vector<2x256xf32>
    %cst_23 = arith.constant dense<0xFF800000> : vector<2xf32>
    %70 = vector.multi_reduction <maximumf>, %69, %cst_23 [1] : vector<2x256xf32> to vector<2xf32>
    %71 = vector.shape_cast %70 : vector<2xf32> to vector<2x1xf32>
    %72 = vector.broadcast %71 : vector<2x1xf32> to vector<2x256xf32>
    %73 = arith.subf %69, %72 : vector<2x256xf32>
    %74 = math.exp %73 : vector<2x256xf32>
    %cst_24 = arith.constant dense<0.000000e+00> : vector<2xf32>
    %75 = vector.multi_reduction <add>, %74, %cst_24 [1] : vector<2x256xf32> to vector<2xf32>
    %76 = vector.shape_cast %75 : vector<2xf32> to vector<2x1xf32>
    %77 = tpu.reciprocal %76 {approx = true} : vector<2x1xf32> -> vector<2x1xf32>
    %78 = vector.broadcast %77 : vector<2x1xf32> to vector<2x256xf32>
    %79 = arith.mulf %74, %78 : vector<2x256xf32>
    %cst_25 = arith.constant 1.000000e+00 : f32
    %80 = vector.broadcast %cst_25 : f32 to vector<2x256xf32>
    %81 = arith.addf %80, %79 : vector<2x256xf32>
    %82 = vector.shape_cast %81 : vector<2x256xf32> to vector<2x1x256xf32>
    %83 = vector.broadcast %82 : vector<2x1x256xf32> to vector<2x4x256xf32>
    %84 = arith.mulf %25, %83 : vector<2x4x256xf32>
    %c0_26 = arith.constant 0 : index
    %c0_27 = arith.constant 0 : index
    %c0_28 = arith.constant 0 : index
    %85 = vector.load %arg6[%c0_26, %c0_27, %c0_28] : memref<2x4x256xf32, #tpu.memory_space<vmem>>, vector<2x4x256xf32>
    tpu.vector_store %arg6[%c0_26, %c0_27, %c0_28], %84 {strides = array<i32>} : memref<2x4x256xf32, #tpu.memory_space<vmem>>, vector<2x4x256xf32>,
    return
  }
  func.func @transform_0(%arg0: i32) -> (i32, i32, i32) {
    %c0_i32 = arith.constant 0 : i32
    %c0_i32_0 = arith.constant 0 : i32
    %c0_i32_1 = arith.constant 0 : i32
    return %arg0, %c0_i32, %c0_i32_0 : i32, i32, i32
  }
  func.func @transform_1(%arg0: i32) -> (i32, i32) {
    %c0_i32 = arith.constant 0 : i32
    %c0_i32_0 = arith.constant 0 : i32
    %c0_i32_1 = arith.constant 0 : i32
    return %c0_i32, %c0_i32_0 : i32, i32
  }
  func.func @transform_2(%arg0: i32) -> (i32, i32) {
    %c0_i32 = arith.constant 0 : i32
    %c0_i32_0 = arith.constant 0 : i32
    %c0_i32_1 = arith.constant 0 : i32
    return %c0_i32, %c0_i32_0 : i32, i32
  }
  func.func @transform_3(%arg0: i32) -> (i32, i32) {
    %c0_i32 = arith.constant 0 : i32
    %c0_i32_0 = arith.constant 0 : i32
    %c0_i32_1 = arith.constant 0 : i32
    return %c0_i32, %c0_i32_0 : i32, i32
  }
  func.func @transform_4(%arg0: i32) -> i32 {
    %c0_i32 = arith.constant 0 : i32
    %c0_i32_0 = arith.constant 0 : i32
    return %c0_i32 : i32
  }
  func.func @transform_5(%arg0: i32) -> (i32, i32, i32) {
    %c0_i32 = arith.constant 0 : i32
    %c0_i32_0 = arith.constant 0 : i32
    %c0_i32_1 = arith.constant 0 : i32
    return %arg0, %c0_i32, %c0_i32_0 : i32, i32, i32
  }
}

</mosaic_0001>

<bundles_post_ra>
// kernel: tpu_custom_call.1
= control target key start
LH: loop header
LB: loop body
LE: loop exit
PB: predicated region body
PF: predicated region fallthrough
CT: control target
= control target key end

     0   :  { %v384_v1 = vmov 0   ;;  %s555_s0 = inlined_call_operand.vmem [shape: f32[2,4,256], index: 0, kind: input, shape index: {}]   ;;  %s556_s1 = inlined_call_operand.vmem [shape: f32[4,1], index: 1, kind: input, shape index: {}]   ;;  %s557_s2 = inlined_call_operand.vmem [shape: f32[4,1], index: 2, kind: input, shape index: {}]   ;;  %s558_s3 = inlined_call_operand.vmem [shape: f32[4,1], index: 3, kind: input, shape index: {}]   ;;  %s559_s4 = inlined_call_operand.<no memory space> [shape: f32[1], index: 4, kind: input, shape index: {}]   ;;  %s560_s5 = inlined_call_operand.hbm [shape: f32[2,4,256], index: 5, kind: output, shape index: {}]  }
   0x1   :  { %v59_v0 = vld [vmem:[%s556_s1] sm:$0xf]  ;;  %349 = vset.pattern.permute.xlu0 %v384_v1 }
   0x2   :  { %11 = vsyncpa [#allocation4], 0  ;;  %65 = vperm.xlu0 %349, %v59_v0   ;;  %v60_v2 = vld [vmem:[%s557_s2] sm:$0xf]  ;;  %v438_v6 = vld [vmem:[%s555_s0 + $0x8] sm:$0xff]  ;;  %s385_s2 = smov 1   ;;  %v22_v22 = vlaneseq }
   0x3   :  { %v431_v3 = vld [vmem:[%s555_s0] sm:$0xff]  ;;  %v71_v10 = vcombine.high %v438_v6, %v438_v6  ;;  %s386_s0 = smov 127   ;;  %s388_s27 = smov 112   ;;  %vm200_vm10 = vcmask 1043456   ;;  %vm242_vm11 = vcmask 1041409   ;;  %vm247_vm12 = vcmask 1041408  }
   0x4   :  { %v70_v4 = vcombine.high %v431_v3, %v431_v3  ;;  %v61_v21 = vld [vmem:[%s558_s3] sm:$0xf]  ;;  %v448_v23 = vand.u32 127, %v22_v22  ;;  %s387_s3 = smov 16  }
   0x6   :  { %80 = vperm.xlu0 %349, %v60_v2   ;;  %v451_v24 = vadd.s32 128, %v448_v23  ;;  %v29_v25 = vand.u32 15, %v448_v23  ;;  %vm99_vm0 = vcmp.lt.s32.totalorder %v448_v23, 1  ;;  %vm120_vm2 = vcmp.lt.s32.totalorder %v448_v23, 127 }
   0x7   :  { %vm170_vm6 = vcmp.lt.s32.totalorder %v448_v23, 112  ;;  %vm149_vm7 = vcmp.lt.s32.totalorder %v448_v23, 16  ;;  %vm53_vm9 = vcmp.ge.s32.totalorder %v448_v23, 16 }
   0x8   :  { %v36_v28 = vand.u32 15, %v451_v24  ;;  %vm456_vm1 = vcmp.gt.s32.totalorder %v29_v25, 0  ;;  %vm471_vm4 = vcmp.lt.s32.totalorder %v29_v25, 15  ;;  %vm56_vm8 = vcmp.lt.s32.totalorder %v451_v24, 240 }
   0xa   :  { %vm465_vm3 = vcmp.gt.s32.totalorder %v36_v28, 0  ;;  %vm475_vm5 = vcmp.lt.s32.totalorder %v36_v28, 15 }
  0x7d   :  { %v66_v5 = vpop.permute.xlu0 %65 }
  0x7e   :  { %v74_v7 = vmul.f32 %v66_v5, %v431_v3  ;;  %v75_v8 = vmul.f32 %v70_v4, %v66_v5  ;;  %v76_v11 = vmul.f32 %v66_v5, %v438_v6  ;;  %v77_v17 = vmul.f32 %v71_v10, %v66_v5 }
  0x81   :  { %v81_v9 = vpop.permute.xlu0 %80 }
  0x82   :  { %v83_v12 = vadd.f32 %v81_v9, %v74_v7  ;;  %v84_v13 = vadd.f32 %v81_v9, %v75_v8  ;;  %v85_v16 = vadd.f32 %v81_v9, %v76_v11  ;;  %v86_v19 = vadd.f32 %v81_v9, %v77_v17 }
  0x84   :  { %v87_v14 = vmax.f32 %v83_v12, 0.0  ;;  %v88_v15 = vmax.f32 %v84_v13, 0.0  ;;  %v89_v18 = vmax.f32 %v85_v16, 0.0  ;;  %v90_v20 = vmax.f32 %v86_v19, 0.0 }
  0x86   :  { %91 = vrot.lane.b32.xlu1 %v87_v14, %s385_s2  ;;  %95 = vrot.lane.b32.xlu0 %v88_v15, %s385_s2 }
  0x8a   :  { %93 = vrot.lane.b32.xlu1 %v89_v18, %s385_s2  ;;  %112 = vrot.lane.b32.xlu0 %v87_v14, %s386_s0 }
  0x8e   :  { %97 = vrot.lane.b32.xlu1 %v90_v20, %s385_s2  ;;  %116 = vrot.lane.b32.xlu0 %v88_v15, %s386_s0 }
  0x92   :  { %114 = vrot.lane.b32.xlu1 %v89_v18, %s386_s0  ;;  %193 = vperm.xlu0 %349, %v61_v21  }
  0x96   :  { %118 = vrot.lane.b32.xlu1 %v90_v20, %s386_s0 }
  0xf8   :  { %v92_v26 = vpop.permute.xlu1 %91  ;;  %v96_v27 = vpop.permute.xlu0 %95 }
  0xf9   :  { %v102_v30 = vsel %vm99_vm0, %v96_v27, %v92_v26  ;;  %v100_v35 = vsel %vm99_vm0, %v92_v26, %v96_v27 }
  0xfa   :  { %v108_v33 = vsel %vm456_vm1, %v102_v30, 0.0  ;;  %v109_v43 = vsel %vm465_vm3, %v100_v35, 0.0 }
  0xfb   :  { %v133_v39 = vmax.f32 %v108_v33, %v87_v14  ;;  %v134_v49 = vmax.f32 %v109_v43, %v88_v15 }
  0xfc   :  { %v94_v31 = vpop.permute.xlu1 %93  ;;  %v113_v32 = vpop.permute.xlu0 %112 }
 0x100   :  { %v98_v37 = vpop.permute.xlu1 %97  ;;  %v117_v38 = vpop.permute.xlu0 %116 }
 0x101   :  { %v121_v41 = vsel %vm120_vm2, %v113_v32, %v117_v38  ;;  %v123_v42 = vsel %vm120_vm2, %v117_v38, %v113_v32  ;;  %v103_v45 = vsel %vm99_vm0, %v98_v37, %v94_v31  ;;  %v101_v51 = vsel %vm99_vm0, %v94_v31, %v98_v37 }
 0x102   :  { %v129_v44 = vsel %vm471_vm4, %v121_v41, 0.0  ;;  %v130_v47 = vsel %vm475_vm5, %v123_v42, 0.0  ;;  %v110_v50 = vsel %vm456_vm1, %v103_v45, 0.0  ;;  %v111_v57 = vsel %vm465_vm3, %v101_v51, 0.0 }
 0x103   :  { %v489_v46 = vmax.f32 %v133_v39, %v129_v44  ;;  %v138_v52 = vmax.f32 %v134_v49, %v130_v47  ;;  %v135_v54 = vmax.f32 %v110_v50, %v89_v18  ;;  %v136_v61 = vmax.f32 %v111_v57, %v90_v20 }
 0x104   :  { %v115_v48 = vpop.permute.xlu1 %114 }
 0x105   :  { %141 = vrot.lane.b32.xlu0 %v489_v46, %s387_s3 }
 0x108   :  { %v119_v53 = vpop.permute.xlu1 %118 }
 0x109   :  { %v122_v55 = vsel %vm120_vm2, %v115_v48, %v119_v53  ;;  %v124_v56 = vsel %vm120_vm2, %v119_v53, %v115_v48  ;;  %145 = vrot.lane.b32.xlu0 %v138_v52, %s387_s3 }
 0x10a   :  { %v131_v58 = vsel %vm471_vm4, %v122_v55, 0.0  ;;  %v132_v60 = vsel %vm475_vm5, %v124_v56, 0.0 }
 0x10b   :  { %v139_v59 = vmax.f32 %v135_v54, %v131_v58  ;;  %v140_v62 = vmax.f32 %v136_v61, %v132_v60 }
 0x10d   :  { %143 = vrot.lane.b32.xlu1 %v139_v59, %s387_s3  ;;  %164 = vrot.lane.b32.xlu0 %v139_v59, %s388_s27  ;;  %v194_v63 = vpop.permute.xlu0 %193 }
 0x111   :  { %147 = vrot.lane.b32.xlu1 %v140_v62, %s387_s3  ;;  %168 = vrot.lane.b32.xlu0 %v140_v62, %s388_s27 }
 0x115   :  { %162 = vrot.lane.b32.xlu1 %v489_v46, %s388_s27 }
 0x119   :  { %166 = vrot.lane.b32.xlu1 %v138_v52, %s388_s27 }
 0x177   :  { %v142_v0 = vpop.permute.xlu0 %141 }
 0x17b   :  { %v146_v1 = vpop.permute.xlu0 %145 }
 0x17c   :  { %v152_v11 = vsel %vm149_vm7, %v146_v1, %v142_v0  ;;  %v150_v19 = vsel %vm149_vm7, %v142_v0, %v146_v1 }
 0x17d   :  { %v158_v20 = vsel %vm53_vm9, %v152_v11, 0.0  ;;  %v184_v28 = vmax.f32 %v150_v19, %v138_v52 }
 0x17e   :  { %v183_v27 = vmax.f32 %v158_v20, %v489_v46 }
 0x17f   :  { %v144_v2 = vpop.permute.xlu1 %143  ;;  %v165_v4 = vpop.permute.xlu0 %164 }
 0x183   :  { %v148_v5 = vpop.permute.xlu1 %147  ;;  %v169_v7 = vpop.permute.xlu0 %168 }
 0x184   :  { %v151_v8 = vsel %vm149_vm7, %v144_v2, %v148_v5  ;;  %v153_v9 = vsel %vm149_vm7, %v148_v5, %v144_v2  ;;  %v174_v10 = vsel %vm170_vm6, %v169_v7, %v165_v4  ;;  %v172_v16 = vsel %vm170_vm6, %v165_v4, %v169_v7 }
 0x185   :  { %v160_v12 = vsel %vm53_vm9, %v153_v9, 0.0  ;;  %v186_v13 = vmax.f32 %v151_v8, %v140_v62  ;;  %v182_v14 = vsel %vm56_vm8, %v174_v10, 0.0 }
 0x186   :  { %v185_v15 = vmax.f32 %v160_v12, %v139_v59  ;;  %v229_v59 = vstv %s559_s4  ;;  %s389_s4 = smov [#allocation3]  }
 0x187   :  { %v190_v17 = vmax.f32 %v186_v13, %v182_v14  ;;  %v163_v18 = vpop.permute.xlu1 %162  ;;  %s330_s30 = sshll.u32 %s389_s4, 4  ;;  %s331_s30 = int_to_ptr.vmem [resolvable:$true] %s330_s30 }
 0x188   :  { %v189_v21 = vmax.f32 %v185_v15, %v172_v16  ;;  %s362_s6 = scalar_lea.vmem %s331_s30, 256  ;;  %p367_p1 = scmp.lt.s32.totalorder %s331_s30, %s331_s30 }
 0x189   :  { %v199_v25 = vmul.f32 %v194_v63, %v190_v17  ;;  %p363_p0 = scmp.ne.s32.totalorder %s331_s30, %s362_s6  ;;  %p368_p2 = scmp.lt.s32.totalorder %s362_s6, %s362_s6 }
 0x18a   :  { %v198_v26 = vmul.f32 %v194_v63, %v189_v21 }
 0x18b   :  { %v222_v29 = vsel %vm200_vm10, %v199_v25, 0.0  ;;  %v167_v30 = vpop.permute.xlu1 %166  ;;  %p369_p3 = por %p368_p2, %p367_p1 }
 0x18c   :  { %v215_v31 = vsel %vm200_vm10, %v198_v26, 0.0  ;;  %v223_v32 = vrot.slane %v222_v29, 4  ;;  %v171_v33 = vsel %vm170_vm6, %v163_v18, %v167_v30  ;;  %v173_v34 = vsel %vm170_vm6, %v167_v30, %v163_v18 }
 0x18d   :  { %v216_v35 = vrot.slane %v215_v31, 4  ;;  %v180_v36 = vsel %vm56_vm8, %v173_v34, 0.0  ;;  %v187_v37 = vmax.f32 %v183_v27, %v171_v33  ;;  %p370_p4 = pnand %p369_p3, %p363_p0 }
 0x18e   :  { %v224_v38 = vadd.f32 %v223_v32, %v222_v29  ;;  %v188_v39 = vmax.f32 %v184_v28, %v180_v36 }
 0x18f   :  { %v217_v40 = vadd.f32 %v216_v35, %v215_v31  ;;  %v196_v41 = vmul.f32 %v194_v63, %v187_v37 }
 0x190   :  { %v225_v42 = vrot.slane %v224_v38, 2  ;;  %v197_v43 = vmul.f32 %v194_v63, %v188_v39 }
 0x191   :  { %v218_v44 = vrot.slane %v217_v40, 2  ;;  %v201_v45 = vsel %vm200_vm10, %v196_v41, 0.0 }
 0x192   :  { %v226_v46 = vadd.f32 %v225_v42, %v224_v38  ;;  %v202_v47 = vrot.slane %v201_v45, 4  ;;  %v208_v48 = vsel %vm200_vm10, %v197_v43, 0.0 }
 0x193   :  { %v219_v23 = vadd.f32 %v218_v44, %v217_v40  ;;  %v209_v49 = vrot.slane %v208_v48, 4  ;;  %v298_v40 = vshrl.u32 %v22_v22, 7 }
 0x194   :  { %v203_v50 = vadd.f32 %v202_v47, %v201_v45  ;;  %v227_v52 = vrot.slane %v226_v46, 1 }
 0x195   :  { %v220_v51 = vrot.slane %v219_v23, 1  ;;  %v210_v24 = vadd.f32 %v209_v49, %v208_v48  ;;  %v299_v45 = vsub.s32 0, %v298_v40 }
 0x196   :  { %v204_v53 = vrot.slane %v203_v50, 2  ;;  %v228_v58 = vadd.f32 %v227_v52, %v226_v46 }
 0x197   :  { %v211_v54 = vrot.slane %v210_v24, 2  ;;  %v221_v56 = vadd.f32 %v220_v51, %v219_v23 }
 0x198   :  { %v205_v55 = vadd.f32 %v204_v53, %v203_v50  ;;  %v233_v1 = vadd.f32 %v229_v59, %v228_v58 }
 0x199   :  { %v212_v57 = vadd.f32 %v211_v54, %v210_v24  ;;  %v232_v63 = vadd.f32 %v229_v59, %v221_v56 }
 0x19a   :  { %v206_v60 = vrot.slane %v205_v55, 1  ;;  %v237_v9 = vmax.f32 %v233_v1, 0.0 }
 0x19b   :  { %v213_v61 = vrot.slane %v212_v57, 1  ;;  %v236_v7 = vmax.f32 %v232_v63, 0.0 }
 0x19c   :  { %v207_v62 = vadd.f32 %v206_v60, %v205_v55 }
 0x19d   :  { %v214_v0 = vadd.f32 %v213_v61, %v212_v57 }
 0x19e   :  { %v230_v2 = vadd.f32 %v229_v59, %v207_v62 }
 0x19f   :  { %v231_v4 = vadd.f32 %v229_v59, %v214_v0 }
 0x1a0   :  { %v234_v5 = vmax.f32 %v230_v2, 0.0 }
 0x1a1   :  { %v235_v8 = vmax.f32 %v231_v4, 0.0 }
 0x1a2   :  { %v243_v10 = vsel %vm242_vm11, %v236_v7, %v234_v5 }
 0x1a3   :  { %v244_v11 = vsel %vm242_vm11, %v237_v9, %v235_v8  ;;  %v248_v12 = vsel %vm247_vm12, %v243_v10, -inf }
 0x1a4   :  { %v249_v13 = vsel %vm247_vm12, %v244_v11, -inf }
 0x1a5   :  { %v250_v14 = vmax.f32 %v248_v12, %v249_v13 }
 0x1a7   :  { %251 = vmax.xlane.f32.xlu1 %v250_v14 }
 0x230   :  { %v252_v15 = vpop.xlane.xlu1 %251 }
 0x231   :  { %v254_v16 = vrot.slane %v252_v15, 1  ;;  %v257_v17 = vsub.f32 %v234_v5, %v252_v15  ;;  %v258_v18 = vsub.f32 %v235_v8, %v252_v15 }
 0x233   :  { %v259_v19 = vsub.f32 %v236_v7, %v254_v16  ;;  %v260_v20 = vsub.f32 %v237_v9, %v254_v16  ;;  %v261_v21 = vmul.f32 1.442695, %v257_v17  ;;  %v263_v27 = vmul.f32 1.442695, %v258_v18 }
 0x235   :  { %v265_v25 = vmul.f32 1.442695, %v259_v19  ;;  %v267_v26 = vmul.f32 1.442695, %v260_v20 }
 0x237   :  { %352 = vpow2.f32 %v265_v25 }
 0x238   :  { %354 = vpow2.f32 %v267_v26 }
 0x239   :  { %356 = vpow2.f32 %v261_v21 }
 0x23a   :  { %358 = vpow2.f32 %v263_v27 }
 0x244   :  { %v353_v28 = vpop.eup %352 }
 0x245   :  { %v355_v29 = vpop.eup %354  ;;  %v273_v30 = vrot.slane %v353_v28, 7 }
 0x246   :  { %v357_v31 = vpop.eup %356  ;;  %v275_v32 = vrot.slane %v355_v29, 7 }
 0x247   :  { %v359_v33 = vpop.eup %358  ;;  %v274_v34 = vsel %vm242_vm11, %v273_v30, %v357_v31 }
 0x248   :  { %v276_v35 = vsel %vm242_vm11, %v275_v32, %v359_v33  ;;  %v279_v36 = vsel %vm247_vm12, %v274_v34, 0.0 }
 0x249   :  { %v280_v37 = vsel %vm247_vm12, %v276_v35, 0.0 }
 0x24a   :  { %v281_v38 = vadd.f32 %v280_v37, %v279_v36 }
 0x24c   :  { %282 = vadd.xlane.f32.xlu0 %v281_v38 }
 0x2d5   :  { %v283_v39 = vpop.xlane.xlu0 %282 }
 0x2d6   :  { %360 = vrcp.f32 %v283_v39 }
 0x2e3   :  { %v361_v41 = vpop.eup %360 }
 0x2e4   :  { %v286_v42 = vrot.slane %v361_v41, 1  ;;  %v289_v43 = vmul.f32 %v361_v41, %v357_v31  ;;  %v290_v44 = vmul.f32 %v361_v41, %v359_v33 }
 0x2e6   :  { %v291_v46 = vmul.f32 %v353_v28, %v286_v42  ;;  %v292_v47 = vmul.f32 %v355_v29, %v286_v42  ;;  %v293_v48 = vadd.f32 1.0, %v289_v43  ;;  %v294_v23 = vadd.f32 1.0, %v290_v44 }
 0x2e8   :  { %v295_v49 = vadd.f32 1.0, %v291_v46  ;;  %v296_v50 = vadd.f32 1.0, %v292_v47  ;;  %v300_v51 = vrot.slane %v293_v48, %v299_v45  ;;  %v304_v24 = vrot.slane %v294_v23, %v299_v45 }
 0x2ea   :  { %v308_v52 = vrot.slane %v295_v49, %v299_v45  ;;  %v312_v53 = vrot.slane %v296_v50, %v299_v45  ;;  %v317_v54 = vcombine.low %v300_v51, %v304_v24 }
 0x2ec   :  { %v318_v55 = vcombine.low %v308_v52, %v312_v53  ;;  %v321_v22 = vmul.f32 %v317_v54, %v431_v3 }
 0x2ee   :  { %v322_v56 = vmul.f32 %v318_v55, %v438_v6  ;;  %323 = vst [vmem:[#allocation3] sm:$0xff] %v321_v22 }
 0x2f0   :  { %324 = vst [vmem:[#allocation3 + $0x8] sm:$0xff] %v322_v56 }
 0x2f1   :  { %373 = shalt.err (!%p370_p4)
}
 0x2f2   :  { %s390_s7 = smov 128   ;;  %s391_s8 = smov 8  }
 0x2f3   :  { %336 = dma.vmem_to_hbm [thread:$0]  %s331_s30, 256, %s560_s5, [#allocation4], %s390_s7, %s390_s7, %s391_s8  }
 0x2f4   :  { %382 = dma.done.wait [#allocation4], 256  }
 0x2f5   :  { %383 = vsyncadd [#allocation4], 4294967040 }
 0x2f6   :  { %340 = vsyncpa [#allocation4], 1 }

</bundles_post_ra>
